<compile_context>
chip_gen: v5e
topology: v5e:2x2
jax: 0.10.0
libtpu: 0.0.40
codegen_flags: <defaults>
</compile_context>

<pallas_src>
import functools
import math

import jax
import jax.numpy as jnp
from jax.experimental import pallas as pl
from jax.experimental.pallas import tpu as pltpu

LOG_STD_MAX = 2.0
LOG_STD_MIN = -20.0
DENOM = max(abs(LOG_STD_MIN), LOG_STD_MAX)  # 20.0
INV_DENOM = 1.0 / DENOM

# Physical per-core VMEM used for tile budgeting (v5e/v6e: 128 MiB, v7x: 64 MiB).
try:
    _VMEM_PHYS_BYTES = int(pltpu.get_tpu_info().vmem_capacity_bytes)
except Exception:  # conservative fallback = v7x
    _VMEM_PHYS_BYTES = 64 * 1024 * 1024


def _q_critic_kernel(n_hidden, compute_dtype, state_ref, action_ref, *refs):
    """refs = (W1s, W1a, b1, [W_j, b_j]*(n_hidden-1), Whead, bhead, out_ref).

    Inputs arrive as (TB, feat); all activations are (features, TB) so batch
    lives on the 128 lanes.
    """
    out_ref = refs[-1]
    p = refs[:-1]

    xs = state_ref[...]   # (TB, state_dim)  f32
    xa = action_ref[...]  # (TB, action_dim) f32

    # Layer 1: concat-free, transpose-free.  dot_general contracts the minor
    # dim of both operands (q @ k.T pattern) -> result (H, TB), f32 accumulate.
    dn = (((1,), (1,)), ((), ()))
    h = (jax.lax.dot_general(p[0][...], xs, dn, preferred_element_type=jnp.float32)
         + jax.lax.dot_general(p[1][...], xa, dn, preferred_element_type=jnp.float32)
         + p[2][...])
    h = jnp.maximum(h, 0.0)

    idx = 3
    for _ in range(n_hidden - 1):
        w = p[idx][...]
        b = p[idx + 1][...]
        idx += 2
        h = jnp.dot(w, h.astype(compute_dtype),
                    preferred_element_type=jnp.float32) + b
        h = jnp.maximum(h, 0.0)

    # Fused heads: one (2, H) @ (H, TB) matmul. row 0 = mean, row 1 = raw log_std.
    whead = p[idx][...]
    bhead = p[idx + 1][...]
    out = jnp.dot(whead, h.astype(compute_dtype),
                  preferred_element_type=jnp.float32) + bhead  # (2, TB) f32

    # Tail in f32: tanh only on the log_std row, multiply instead of divide,
    # single where-clamp, then one lane-dense (2, TB) store.
    t = jnp.tanh(out[1:2, :] * INV_DENOM)                      # (1, TB)
    log_std = jnp.where(t >= 0.0, LOG_STD_MAX * t, -LOG_STD_MIN * t)
    row = jax.lax.broadcasted_iota(jnp.int32, out.shape, 0)
    out_ref[...] = jnp.where(row == 0, out, log_std).astype(out_ref.dtype)


def _pack_params(params, state_dim, compute_dtype):
    """params: torch-style [(W1,b1),...,(Wn,bn),(Wmu,bmu),(Wls,bls)],
    W: (out,in), b: (out,). Returns the kernel param list: W1 split
    (kept f32), hidden/head weights in compute_dtype, biases as f32 columns,
    heads fused into a single (2, H) weight."""
    hidden = params[:-2]
    (wmu, bmu), (wls, bls) = params[-2], params[-1]

    w1, b1 = hidden[0]
    flat = [
        w1[:, :state_dim].astype(jnp.float32),   # W1_state  (H, state_dim)
        w1[:, state_dim:].astype(jnp.float32),   # W1_action (H, action_dim)
        b1.reshape(-1, 1).astype(jnp.float32),   # (H, 1)
    ]
    for w, b in hidden[1:]:
        flat += [w.astype(compute_dtype), b.reshape(-1, 1).astype(jnp.float32)]

    whead = jnp.concatenate([wmu, wls], axis=0).astype(compute_dtype)       # (2, H)
    bhead = jnp.concatenate([bmu, bls], axis=0).reshape(2, 1).astype(jnp.float32)
    flat += [whead, bhead]
    return flat


@functools.partial(jax.jit, static_argnames=("tile_b", "use_bf16"))
def q_critic_forward(state, action, params, *, tile_b=4096, use_bf16=True):
    """state: (B, state_dim), action: (B, action_dim).
    Returns (mean, log_std), each (B, 1) f32."""
    B, state_dim = state.shape
    action_dim = action.shape[1]
    n_hidden = len(params) - 2
    compute_dtype = jnp.bfloat16 if use_bf16 else jnp.float32

    flat_params = _pack_params(params, state_dim, compute_dtype)
    hidden_sizes = [w.shape[0] for w, _ in params[:-2]]
    max_h = max(hidden_sizes)
    param_bytes = sum(int(p.size) * p.dtype.itemsize for p in flat_params)

    # ---- batch tile selection (amortize per-step overhead; >=2 steps for
    # v7x megacore when B is large; cap by an explicit VMEM budget). --------
    def vmem_estimate(tb_):
        in_bytes = 2 * tb_ * (state_dim + action_dim) * state.dtype.itemsize  # 2x buffered inputs
        out_bytes = 2 * 2 * tb_ * 4                                           # 2x buffered (2, tb)
        act_bytes = 5 * max_h * tb_ * 4                                       # h + casts + relayouts (generous)
        return in_bytes + out_bytes + 2 * param_bytes + act_bytes

    vmem_budget = _VMEM_PHYS_BYTES // 2  # leave headroom for compiler scratch

    if B <= 256:
        tb = B                                     # single full-batch block
    else:
        # at least 2 lane-aligned steps so ("parallel",) spans both v7x TCs
        tb = min(int(tile_b), 128 * pl.cdiv(pl.cdiv(B, 2), 128))
        tb = max(tb, 128)
        while tb > 128 and vmem_estimate(tb) > vmem_budget:
            tb = max(128, (tb // 2 // 128) * 128)
    grid = (pl.cdiv(B, tb),)

    vmem_limit = int(min(int(0.75 * _VMEM_PHYS_BYTES),
                         max(4 * vmem_estimate(tb), 32 * 1024 * 1024)))

    # ---- specs ------------------------------------------------------------
    def data_spec(feat):
        return pl.BlockSpec((tb, feat), lambda i: (i, 0))

    # Weights/biases: full-array blocks, same block every step -> VMEM-resident.
    # (For large hid_shape, add pipeline_mode=pl.Buffered(1) here to halve
    #  their VMEM footprint; negligible for this toy model.)
    param_specs = [pl.BlockSpec(p.shape, lambda i: (0, 0)) for p in flat_params]

    # ---- advisory cost estimate for the XLA scheduler ----------------------
    dims = [state_dim + action_dim] + hidden_sizes
    flops = 2 * B * (sum(dims[j] * dims[j + 1] for j in range(len(dims) - 1))
                     + 2 * dims[-1])
    bytes_accessed = (int(state.size) * state.dtype.itemsize
                      + int(action.size) * action.dtype.itemsize
                      + param_bytes + 2 * B * 4)
    cost = pl.CostEstimate(flops=int(flops), transcendentals=int(B),
                           bytes_accessed=int(bytes_accessed))

    kernel = functools.partial(_q_critic_kernel, n_hidden, compute_dtype)

    out_t = pl.pallas_call(
        kernel,
        out_shape=jax.ShapeDtypeStruct((2, B), jnp.float32),
        grid=grid,
        in_specs=[data_spec(state_dim), data_spec(action_dim)] + param_specs,
        out_specs=pl.BlockSpec((2, tb), lambda i: (0, i)),
        compiler_params=pltpu.CompilerParams(
            dimension_semantics=("parallel",),
            vmem_limit_bytes=vmem_limit),
        cost_estimate=cost,
    )(state, action, *flat_params)

    mean = out_t[0].reshape(B, 1)
    log_std = out_t[1].reshape(B, 1)
    return mean, log_std


def init_params(key, state_dim, action_dim, hid_shape):
    """Torch-style init mimicking nn.Linear: W (out,in), b (out,), U(+/-1/sqrt(fan_in))."""
    dims = [state_dim + action_dim] + list(hid_shape)
    params = []
    for j in range(len(dims) - 1):
        key, kw, kb = jax.random.split(key, 3)
        bound = 1.0 / math.sqrt(dims[j])
        w = jax.random.uniform(kw, (dims[j + 1], dims[j]), jnp.float32, -bound, bound)
        b = jax.random.uniform(kb, (dims[j + 1],), jnp.float32, -bound, bound)
        params.append((w, b))
    for _ in range(2):  # mu head, log_std head
        key, kw, kb = jax.random.split(key, 3)
        bound = 1.0 / math.sqrt(dims[-1])
        w = jax.random.uniform(kw, (1, dims[-1]), jnp.float32, -bound, bound)
        b = jax.random.uniform(kb, (1,), jnp.float32, -bound, bound)
        params.append((w, b))
    return params


def q_critic_ref(state, action, params):
    """Pure-JAX reference of the PyTorch forward (torch weight layout)."""
    sa = jnp.concatenate([state, action], axis=1)
    h = sa
    for w, b in params[:-2]:
        h = jnp.maximum(h @ w.T + b, 0.0)
    (wmu, bmu), (wls, bls) = params[-2], params[-1]
    mean = h @ wmu.T + bmu
    t = jnp.tanh((h @ wls.T + bls) / DENOM)
    log_std = jnp.maximum(LOG_STD_MAX * t, 0.0) + jnp.minimum(-LOG_STD_MIN * t, 0.0)
    return mean, log_std


if __name__ == "__main__":
    key = jax.random.PRNGKey(0)

    batch, state_dim, action_dim = 8, 12, 4
    hid_shape = (32, 32)

    key, ks, ka, kp = jax.random.split(key, 4)
    state = jax.random.normal(ks, (batch, state_dim), jnp.float32)
    action = jax.random.normal(ka, (batch, action_dim), jnp.float32)
    params = init_params(kp, state_dim, action_dim, hid_shape)

    # 1) Small-batch path, f32 operands (tight check).
    mean, log_std = q_critic_forward(state, action, params, use_bf16=False)
    jax.block_until_ready((mean, log_std))
    mean_ref, log_std_ref = q_critic_ref(state, action, params)
    assert mean.shape == (batch, 1) and log_std.shape == (batch, 1)
    assert jnp.allclose(mean, mean_ref, atol=1e-4, rtol=1e-4), "mean mismatch"
    assert jnp.allclose(log_std, log_std_ref, atol=1e-4, rtol=1e-4), "log_std mismatch"

    # 2) Batch-tiled grid path (multiple tiles + ragged final tile), f32.
    batch2 = 260
    key, ks2, ka2 = jax.random.split(key, 3)
    state2 = jax.random.normal(ks2, (batch2, state_dim), jnp.float32)
    action2 = jax.random.normal(ka2, (batch2, action_dim), jnp.float32)
    mean2, log_std2 = q_critic_forward(state2, action2, params, tile_b=128, use_bf16=False)
    jax.block_until_ready((mean2, log_std2))
    mean2_ref, log_std2_ref = q_critic_ref(state2, action2, params)
    assert jnp.allclose(mean2, mean2_ref, atol=1e-4, rtol=1e-4), "tiled mean mismatch"
    assert jnp.allclose(log_std2, log_std2_ref, atol=1e-4, rtol=1e-4), "tiled log_std mismatch"

    # 3) Default config, larger batch -> >=2 grid steps (v7x megacore), f32 tight check.
    batch3 = 512
    key, ks3, ka3 = jax.random.split(key, 3)
    state3 = jax.random.normal(ks3, (batch3, state_dim), jnp.float32)
    action3 = jax.random.normal(ka3, (batch3, action_dim), jnp.float32)
    mean3, log_std3 = q_critic_forward(state3, action3, params, use_bf16=False)
    jax.block_until_ready((mean3, log_std3))
    mean3_ref, log_std3_ref = q_critic_ref(state3, action3, params)
    assert jnp.allclose(mean3, mean3_ref, atol=1e-4, rtol=1e-4), "2-step mean mismatch"
    assert jnp.allclose(log_std3, log_std3_ref, atol=1e-4, rtol=1e-4), "2-step log_std mismatch"

    # 4) Default bf16-operand path (loose tolerance: expected bf16 rounding, not a bug).
    mean4, log_std4 = q_critic_forward(state3, action3, params)  # defaults: bf16, tile_b=4096
    jax.block_until_ready((mean4, log_std4))
    assert jnp.allclose(mean4, mean3_ref, atol=5e-2, rtol=5e-2), "bf16 mean mismatch"
    assert jnp.allclose(log_std4, log_std3_ref, atol=5e-2, rtol=5e-2), "bf16 log_std mismatch"

    # TODO(synk): Q_Critic.evaluate() (Normal sampling + clamp) is host-side RL glue,
    # not part of forward(); implement with jax.random outside the kernel if needed.
    print("KERNEL_OK")
</pallas_src>

<mosaic_0001>
module attributes {stable_mosaic.version = 11 : i64} {
  func.func @_q_critic_kernel(%arg0: i32, %arg1: memref<8x12xf32, #tpu.memory_space<vmem>>, %arg2: memref<8x4xf32, #tpu.memory_space<vmem>>, %arg3: memref<32x12xf32, #tpu.memory_space<vmem>>, %arg4: memref<32x4xf32, #tpu.memory_space<vmem>>, %arg5: memref<32x1xf32, #tpu.memory_space<vmem>>, %arg6: memref<32x32xf32, #tpu.memory_space<vmem>>, %arg7: memref<32x1xf32, #tpu.memory_space<vmem>>, %arg8: memref<2x32xf32, #tpu.memory_space<vmem>>, %arg9: memref<2x1xf32, #tpu.memory_space<vmem>>, %arg10: memref<2x8xf32, #tpu.memory_space<vmem>>) attributes {dimension_semantics = [#tpu.dimension_semantics<parallel>], iteration_bounds = array<i64: 1>, scalar_prefetch = 0 : i64, scratch_operands = 0 : i64, tpu.core_type = #tpu.core_type<tc>, window_params = [{transform_indices = @transform_0, window_bounds = array<i64: 8, 12>}, {transform_indices = @transform_1, window_bounds = array<i64: 8, 4>}, {pipeline_mode = #tpu.pipeline_mode<synchronous>, transform_indices = @transform_2, window_bounds = array<i64: 32, 12>}, {pipeline_mode = #tpu.pipeline_mode<synchronous>, transform_indices = @transform_3, window_bounds = array<i64: 32, 4>}, {pipeline_mode = #tpu.pipeline_mode<synchronous>, transform_indices = @transform_4, window_bounds = array<i64: 32, 1>}, {pipeline_mode = #tpu.pipeline_mode<synchronous>, transform_indices = @transform_5, window_bounds = array<i64: 32, 32>}, {pipeline_mode = #tpu.pipeline_mode<synchronous>, transform_indices = @transform_6, window_bounds = array<i64: 32, 1>}, {pipeline_mode = #tpu.pipeline_mode<synchronous>, transform_indices = @transform_7, window_bounds = array<i64: 2, 32>}, {pipeline_mode = #tpu.pipeline_mode<synchronous>, transform_indices = @transform_8, window_bounds = array<i64: 2, 1>}, {transform_indices = @transform_9, window_bounds = array<i64: 2, 8>}]} {
    %c0 = arith.constant 0 : index
    %c0_0 = arith.constant 0 : index
    %0 = vector.load %arg1[%c0, %c0_0] : memref<8x12xf32, #tpu.memory_space<vmem>>, vector<8x12xf32>
    %c0_1 = arith.constant 0 : index
    %c0_2 = arith.constant 0 : index
    %1 = vector.load %arg2[%c0_1, %c0_2] : memref<8x4xf32, #tpu.memory_space<vmem>>, vector<8x4xf32>
    %c0_3 = arith.constant 0 : index
    %c0_4 = arith.constant 0 : index
    %2 = vector.load %arg3[%c0_3, %c0_4] : memref<32x12xf32, #tpu.memory_space<vmem>>, vector<32x12xf32>
    %cst = arith.constant dense<0.000000e+00> : vector<32x8xf32>
    %3 = tpu.matmul %2, %0, %cst {dimension_numbers = #tpu.dot_dimension_numbers<[1], [1], [0], [0], [0, 0, 1, 0], [], []>} : vector<32x12xf32>, vector<8x12xf32>, vector<32x8xf32> -> vector<32x8xf32>
    %c0_5 = arith.constant 0 : index
    %c0_6 = arith.constant 0 : index
    %4 = vector.load %arg4[%c0_5, %c0_6] : memref<32x4xf32, #tpu.memory_space<vmem>>, vector<32x4xf32>
    %cst_7 = arith.constant dense<0.000000e+00> : vector<32x8xf32>
    %5 = tpu.matmul %4, %1, %cst_7 {dimension_numbers = #tpu.dot_dimension_numbers<[1], [1], [0], [0], [0, 0, 1, 0], [], []>} : vector<32x4xf32>, vector<8x4xf32>, vector<32x8xf32> -> vector<32x8xf32>
    %6 = arith.addf %3, %5 : vector<32x8xf32>
    %c0_8 = arith.constant 0 : index
    %c0_9 = arith.constant 0 : index
    %7 = vector.load %arg5[%c0_8, %c0_9] : memref<32x1xf32, #tpu.memory_space<vmem>>, vector<32x1xf32>
    %8 = vector.broadcast %7 : vector<32x1xf32> to vector<32x8xf32>
    %9 = arith.addf %6, %8 : vector<32x8xf32>
    %cst_10 = arith.constant 0.000000e+00 : f32
    %10 = vector.broadcast %cst_10 : f32 to vector<32x8xf32>
    %11 = arith.maximumf %9, %10 : vector<32x8xf32>
    %c0_11 = arith.constant 0 : index
    %c0_12 = arith.constant 0 : index
    %12 = vector.load %arg6[%c0_11, %c0_12] : memref<32x32xf32, #tpu.memory_space<vmem>>, vector<32x32xf32>
    %c0_13 = arith.constant 0 : index
    %c0_14 = arith.constant 0 : index
    %13 = vector.load %arg7[%c0_13, %c0_14] : memref<32x1xf32, #tpu.memory_space<vmem>>, vector<32x1xf32>
    %cst_15 = arith.constant dense<0.000000e+00> : vector<32x8xf32>
    %14 = tpu.matmul %12, %11, %cst_15 {dimension_numbers = #tpu.dot_dimension_numbers<[1], [0], [0], [1], [0, 0, 1, 1], [], []>} : vector<32x32xf32>, vector<32x8xf32>, vector<32x8xf32> -> vector<32x8xf32>
    %15 = vector.broadcast %13 : vector<32x1xf32> to vector<32x8xf32>
    %16 = arith.addf %14, %15 : vector<32x8xf32>
    %cst_16 = arith.constant 0.000000e+00 : f32
    %17 = vector.broadcast %cst_16 : f32 to vector<32x8xf32>
    %18 = arith.maximumf %16, %17 : vector<32x8xf32>
    %c0_17 = arith.constant 0 : index
    %c0_18 = arith.constant 0 : index
    %19 = vector.load %arg8[%c0_17, %c0_18] : memref<2x32xf32, #tpu.memory_space<vmem>>, vector<2x32xf32>
    %c0_19 = arith.constant 0 : index
    %c0_20 = arith.constant 0 : index
    %20 = vector.load %arg9[%c0_19, %c0_20] : memref<2x1xf32, #tpu.memory_space<vmem>>, vector<2x1xf32>
    %cst_21 = arith.constant dense<0.000000e+00> : vector<2x8xf32>
    %21 = tpu.matmul %19, %18, %cst_21 {dimension_numbers = #tpu.dot_dimension_numbers<[1], [0], [0], [1], [0, 0, 1, 1], [], []>} : vector<2x32xf32>, vector<32x8xf32>, vector<2x8xf32> -> vector<2x8xf32>
    %22 = vector.broadcast %20 : vector<2x1xf32> to vector<2x8xf32>
    %23 = arith.addf %21, %22 : vector<2x8xf32>
    %24 = vector.extract_strided_slice %23 {offsets = [1, 0], sizes = [1, 8], strides = [1, 1]} : vector<2x8xf32> to vector<1x8xf32>
    %cst_22 = arith.constant 5.000000e-02 : f32
    %25 = vector.broadcast %cst_22 : f32 to vector<1x8xf32>
    %26 = arith.mulf %24, %25 : vector<1x8xf32>
    %27 = math.tanh %26 : vector<1x8xf32>
    %cst_23 = arith.constant 0.000000e+00 : f32
    %28 = vector.broadcast %cst_23 : f32 to vector<1x8xf32>
    %29 = arith.cmpf oge, %27, %28 : vector<1x8xf32>
    %cst_24 = arith.constant 2.000000e+00 : f32
    %30 = vector.broadcast %cst_24 : f32 to vector<1x8xf32>
    %31 = arith.mulf %30, %27 : vector<1x8xf32>
    %cst_25 = arith.constant 2.000000e+01 : f32
    %32 = vector.broadcast %cst_25 : f32 to vector<1x8xf32>
    %33 = arith.mulf %32, %27 : vector<1x8xf32>
    %34 = arith.select %29, %31, %33 : vector<1x8xi1>, vector<1x8xf32>
    %35 = tpu.iota {dimensions = array<i32: 0>} : vector<2x8xi32>
    %c0_i32 = arith.constant 0 : i32
    %36 = vector.broadcast %c0_i32 : i32 to vector<2x8xi32>
    %37 = arith.cmpi eq, %35, %36 : vector<2x8xi32>
    %38 = vector.shape_cast %34 : vector<1x8xf32> to vector<1x8xf32>
    %39 = vector.broadcast %38 : vector<1x8xf32> to vector<2x8xf32>
    %40 = arith.select %37, %23, %39 : vector<2x8xi1>, vector<2x8xf32>
    %c0_26 = arith.constant 0 : index
    %c0_27 = arith.constant 0 : index
    %41 = vector.load %arg10[%c0_26, %c0_27] : memref<2x8xf32, #tpu.memory_space<vmem>>, vector<2x8xf32>
    tpu.vector_store %arg10[%c0_26, %c0_27], %40 {strides = array<i32>} : memref<2x8xf32, #tpu.memory_space<vmem>>, vector<2x8xf32>,
    return
  }
  func.func @transform_0(%arg0: i32) -> (i32, i32) {
    %c0_i32 = arith.constant 0 : i32
    %c0_i32_0 = arith.constant 0 : i32
    return %arg0, %c0_i32 : i32, i32
  }
  func.func @transform_1(%arg0: i32) -> (i32, i32) {
    %c0_i32 = arith.constant 0 : i32
    %c0_i32_0 = arith.constant 0 : i32
    return %arg0, %c0_i32 : i32, i32
  }
  func.func @transform_2(%arg0: i32) -> (i32, i32) {
    %c0_i32 = arith.constant 0 : i32
    %c0_i32_0 = arith.constant 0 : i32
    %c0_i32_1 = arith.constant 0 : i32
    return %c0_i32, %c0_i32_0 : i32, i32
  }
  func.func @transform_3(%arg0: i32) -> (i32, i32) {
    %c0_i32 = arith.constant 0 : i32
    %c0_i32_0 = arith.constant 0 : i32
    %c0_i32_1 = arith.constant 0 : i32
    return %c0_i32, %c0_i32_0 : i32, i32
  }
  func.func @transform_4(%arg0: i32) -> (i32, i32) {
    %c0_i32 = arith.constant 0 : i32
    %c0_i32_0 = arith.constant 0 : i32
    %c0_i32_1 = arith.constant 0 : i32
    return %c0_i32, %c0_i32_0 : i32, i32
  }
  func.func @transform_5(%arg0: i32) -> (i32, i32) {
    %c0_i32 = arith.constant 0 : i32
    %c0_i32_0 = arith.constant 0 : i32
    %c0_i32_1 = arith.constant 0 : i32
    return %c0_i32, %c0_i32_0 : i32, i32
  }
  func.func @transform_6(%arg0: i32) -> (i32, i32) {
    %c0_i32 = arith.constant 0 : i32
    %c0_i32_0 = arith.constant 0 : i32
    %c0_i32_1 = arith.constant 0 : i32
    return %c0_i32, %c0_i32_0 : i32, i32
  }
  func.func @transform_7(%arg0: i32) -> (i32, i32) {
    %c0_i32 = arith.constant 0 : i32
    %c0_i32_0 = arith.constant 0 : i32
    %c0_i32_1 = arith.constant 0 : i32
    return %c0_i32, %c0_i32_0 : i32, i32
  }
  func.func @transform_8(%arg0: i32) -> (i32, i32) {
    %c0_i32 = arith.constant 0 : i32
    %c0_i32_0 = arith.constant 0 : i32
    %c0_i32_1 = arith.constant 0 : i32
    return %c0_i32, %c0_i32_0 : i32, i32
  }
  func.func @transform_9(%arg0: i32) -> (i32, i32) {
    %c0_i32 = arith.constant 0 : i32
    %c0_i32_0 = arith.constant 0 : i32
    return %c0_i32, %arg0 : i32, i32
  }
}

</mosaic_0001>

<bundles_post_ra>
// kernel: q_critic_forward.1
= control target key start
LH: loop header
LB: loop body
LE: loop exit
PB: predicated region body
PF: predicated region fallthrough
CT: control target
= control target key end

     0   :  { %vm42_vm0 = vcmask 31744   ;;  %vm87_vm1 = vcmask 97280   ;;  %v310_v2 = vmov 0   ;;  %vm192_vm2 = vcmask 261120   ;;  %s451_s1 = inlined_call_operand.vmem [shape: f32[8,4], index: 1, kind: input, shape index: {}]   ;;  %s452_s0 = inlined_call_operand.vmem [shape: f32[8,12], index: 0, kind: input, shape index: {}]   ;;  %s453_s3 = inlined_call_operand.vmem [shape: f32[32,4], index: 3, kind: input, shape index: {}]   ;;  %s454_s2 = inlined_call_operand.vmem [shape: f32[32,12], index: 2, kind: input, shape index: {}]   ;;  %s455_s4 = inlined_call_operand.vmem [shape: f32[32,1], index: 4, kind: input, shape index: {}]   ;;  %s456_s6 = inlined_call_operand.vmem [shape: f32[32,1], index: 6, kind: input, shape index: {}]   ;;  %s457_s5 = inlined_call_operand.vmem [shape: f32[32,32], index: 5, kind: input, shape index: {}]   ;;  %s458_s8 = inlined_call_operand.vmem [shape: f32[2,1], index: 8, kind: input, shape index: {}]   ;;  %s459_s7 = inlined_call_operand.vmem [shape: f32[2,32], index: 7, kind: input, shape index: {}]   ;;  %s460_s9 = inlined_call_operand.vmem [shape: f32[2,8], index: 9, kind: output, shape index: {}]  }
   0x1   :  { %v33_v0 = vld [vmem:[%s451_s1] sm:$0xff]  ;;  %306 = vset.pattern.permute.xlu1 %v310_v2  ;;  %305 = vset.pattern.permute.xlu0 %v310_v2  ;;  %v133_v5 = vld [vmem:[%s455_s4 + $0x8] sm:$0xff]  ;;  %v135_v6 = vld [vmem:[%s455_s4 + $0x18] sm:$0xff]  ;;  %vm279_vm5 = vcmask 58368  }
   0x2   :  { %v32_v1 = vld [vmem:[%s452_s0] sm:$0xff]  ;;  %285 = vmatpush.xpose.msk.msra.mxu0 %vm42_vm0, %v33_v0  ;;  %143 = vperm.xlu1 %306, %v133_v5   ;;  %v134_v8 = vld [vmem:[%s455_s4 + $0x10] sm:$0xff]  ;;  %v39_v9 = vld [vmem:[%s453_s3 + $0x8] sm:$0xff]  ;;  %v274_v5 = vlaneseq }
   0x3   :  { %290 = vmatpush.xpose.msk.msra.mxu1 %vm87_vm1, %v32_v1  ;;  %v38_v3 = vld [vmem:[%s453_s3] sm:$0xff]  ;;  %307 = vset.pattern.permute.xlu2 %v310_v2  ;;  %v35_v10 = vld [vmem:[%s454_s2 + $0x8] sm:$0xff]  ;;  %v40_v13 = vld [vmem:[%s453_s3 + $0x10] sm:$0xff] }
   0x4   :  { %v34_v4 = vld [vmem:[%s454_s2] sm:$0xff]  ;;  %153 = vperm.xlu0 %305, %v135_v6   ;;  %v169_v12 = vld [vmem:[%s456_s6 + $0x8] sm:$0xff]  ;;  %v36_v14 = vld [vmem:[%s454_s2 + $0x10] sm:$0xff]  ;;  %v275_v6 = vshrl.u32 %v274_v5, 7 }
   0x5   :  { %286 = vmatmul.msk.f32.vlgmr.msra.gmra.mxu0 %vm42_vm0, %v38_v3  ;;  %v132_v7 = vld [vmem:[%s455_s4] sm:$0xff]  ;;  %v41_v15 = vld [vmem:[%s453_s3 + $0x18] sm:$0xff]  ;;  %v170_v38 = vld [vmem:[%s456_s6 + $0x10] sm:$0xff] }
   0x6   :  { %291 = vmatmul.msk.f32.vlgmr.msra.gmra.mxu1 %vm87_vm1, %v34_v4  ;;  %v168_v11 = vld [vmem:[%s456_s6] sm:$0xff]  ;;  %v37_v16 = vld [vmem:[%s454_s2 + $0x18] sm:$0xff]  ;;  %v165_v46 = vld [vmem:[%s457_s5 + $0x8] sm:$0xff]  ;;  %vm276_vm4 = vcmp.eq.s32.totalorder %v275_v6, 0 }
   0x7   :  { %v171_v25 = vld [vmem:[%s456_s6 + $0x18] sm:$0xff]  ;;  %v164_v43 = vld [vmem:[%s457_s5] sm:$0xff]  ;;  %v166_v47 = vld [vmem:[%s457_s5 + $0x10] sm:$0xff] }
   0x8   :  { %189 = vperm.xlu2 %307, %v171_v25   ;;  %v167_v44 = vld [vmem:[%s457_s5 + $0x18] sm:$0xff]  ;;  %v239_v45 = vld [vmem:[%s458_s8] sm:$0x3] }
   0x9   :  { %v238_v0 = vld [vmem:[%s459_s7] sm:$0x3] }
   0xa   :  { %138 = vperm.xlu1 %306, %v132_v7  }
   0xc   :  { %148 = vperm.xlu0 %305, %v134_v8  }
   0xd   :  { %287 = vmatmul.msk.f32.gmra.mxu0 %vm42_vm0, %v39_v9 }
   0xe   :  { %292 = vmatmul.msk.f32.gmra.mxu1 %vm87_vm1, %v35_v10 }
  0x10   :  { %184 = vperm.xlu2 %307, %v170_v38  }
  0x12   :  { %174 = vperm.xlu1 %306, %v168_v11  }
  0x14   :  { %179 = vperm.xlu0 %305, %v169_v12  }
  0x15   :  { %288 = vmatmul.msk.f32.gmra.mxu0 %vm42_vm0, %v40_v13 }
  0x16   :  { %293 = vmatmul.msk.f32.gmra.mxu1 %vm87_vm1, %v36_v14 }
  0x18   :  { %242 = vperm.xlu2 %307, %v239_v45  }
  0x1d   :  { %289 = vmatmul.msk.f32.gmra.mxu0 %vm42_vm0, %v41_v15 }
  0x1e   :  { %294 = vmatmul.msk.f32.gmra.mxu1 %vm87_vm1, %v37_v16 }
  0x62   :  { %v190_v48 = vpop.permute.xlu2 %189 }
  0x6a   :  { %v185_v55 = vpop.permute.xlu2 %184 }
  0x72   :  { %v243_v1 = vpop.permute.xlu2 %242 }
  0x74   :  { %v144_v24 = vpop.permute.xlu1 %143 }
  0x76   :  { %v154_v21 = vpop.permute.xlu0 %153 }
  0x7c   :  { %v139_v35 = vpop.permute.xlu1 %138 }
  0x7e   :  { %v149_v31 = vpop.permute.xlu0 %148 }
  0x82   :  { %v75_v17 = vpop.f32.mrf.mxu0 }
  0x83   :  { %v120_v18 = vpop.f32.mrf.mxu1 }
  0x84   :  { %v121_v32 = vadd.f32 %v120_v18, %v75_v17  ;;  %v175_v59 = vpop.permute.xlu1 %174 }
  0x86   :  { %v156_v39 = vadd.f32 %v139_v35, %v121_v32  ;;  %v180_v54 = vpop.permute.xlu0 %179 }
  0x88   :  { %v160_v42 = vmax.f32 %v156_v39, 0.0 }
  0x8a   :  { %v78_v19 = vpop.f32.mrf.mxu0 }
  0x8b   :  { %v123_v20 = vpop.f32.mrf.mxu1 }
  0x8c   :  { %v124_v29 = vadd.f32 %v123_v20, %v78_v19 }
  0x8e   :  { %v157_v37 = vadd.f32 %v144_v24, %v124_v29 }
  0x90   :  { %v161_v41 = vmax.f32 %v157_v37, 0.0 }
  0x92   :  { %v81_v22 = vpop.f32.mrf.mxu0 }
  0x93   :  { %v126_v23 = vpop.f32.mrf.mxu1 }
  0x94   :  { %v127_v26 = vadd.f32 %v126_v23, %v81_v22 }
  0x96   :  { %v158_v34 = vadd.f32 %v149_v31, %v127_v26 }
  0x98   :  { %v162_v40 = vmax.f32 %v158_v34, 0.0 }
  0x9a   :  { %v84_v27 = vpop.f32.mrf.mxu0 }
  0x9b   :  { %v129_v28 = vpop.f32.mrf.mxu1 }
  0x9c   :  { %v130_v30 = vadd.f32 %v129_v28, %v84_v27 }
  0x9e   :  { %v159_v33 = vadd.f32 %v154_v21, %v130_v30 }
  0xa0   :  { %v163_v36 = vmax.f32 %v159_v33, 0.0 }
  0xa2   :  { %217 = vmatpush.msra.mxu2 %v163_v36  ;;  %300 = vmatpush.msra.mxu3 %v163_v36 }
  0xa4   :  { %218 = vmatpush.msra.mxu2 %v162_v40  ;;  %301 = vmatpush.msra.mxu3 %v162_v40 }
  0xa6   :  { %219 = vmatpush.msra.mxu2 %v161_v41  ;;  %302 = vmatpush.msra.mxu3 %v161_v41 }
  0xa8   :  { %220 = vmatpush.msra.mxu2 %v160_v42  ;;  %303 = vmatpush.msra.mxu3 %v160_v42 }
  0xa9   :  { %295 = vmatmul.msk.f32.vlgmr.msra.gmra.mxu2 %vm192_vm2, %v164_v43  ;;  %298 = vmatmul.msk.f32.vlgmr.msra.gmra.mxu3 %vm192_vm2, %v167_v44 }
  0xb1   :  { %296 = vmatmul.msk.f32.gmra.mxu2 %vm192_vm2, %v165_v46 }
  0xb9   :  { %297 = vmatmul.msk.f32.gmra.mxu2 %vm192_vm2, %v166_v47 }
 0x12c   :  { %v222_v49 = vpop.f32.mrf.mxu2  ;;  %v231_v50 = vpop.f32.mrf.mxu3 }
 0x12d   :  { %v232_v51 = vadd.f32 %v231_v50, %v190_v48  ;;  %v223_v60 = vadd.f32 %v222_v49, %v175_v59 }
 0x12f   :  { %v237_v52 = vmax.f32 %v232_v51, 0.0  ;;  %v234_v63 = vmax.f32 %v223_v60, 0.0 }
 0x131   :  { %260 = vmatpush.msrb.mxu3 %v237_v52 }
 0x134   :  { %v225_v53 = vpop.f32.mrf.mxu2 }
 0x135   :  { %v226_v57 = vadd.f32 %v225_v53, %v180_v54 }
 0x137   :  { %v235_v62 = vmax.f32 %v226_v57, 0.0 }
 0x13c   :  { %v228_v56 = vpop.f32.mrf.mxu2 }
 0x13d   :  { %v229_v58 = vadd.f32 %v228_v56, %v185_v55 }
 0x13f   :  { %v236_v61 = vmax.f32 %v229_v58, 0.0 }
 0x141   :  { %261 = vmatpush.msrb.mxu3 %v236_v61 }
 0x143   :  { %262 = vmatpush.msrb.mxu3 %v235_v62 }
 0x145   :  { %263 = vmatpush.msrb.mxu3 %v234_v63 }
 0x146   :  { %299 = vmatmul.msk.f32.vlgmr.msrb.gmra.mxu3 %vm192_vm2, %v238_v0 }
 0x1c9   :  { %v265_v2 = vpop.f32.mrf.mxu3 }
 0x1ca   :  { %v266_v3 = vadd.f32 %v265_v2, %v243_v1 }
 0x1cc   :  { %v268_v4 = vmul.f32 0.05, %v266_v3 }
 0x1ce   :  { %308 = vtanh.f32 %v268_v4 }
 0x1d4   :  { %v309_v7 = vpop.eup %308 }
 0x1d5   :  { %vm270_vm3 = vcmp.ge.f32.partialorder %v309_v7, 0.0  ;;  %v271_v8 = vmul.f32 2.0, %v309_v7  ;;  %v272_v9 = vmul.f32 20.0, %v309_v7 }
 0x1d7   :  { %v273_v10 = vsel %vm270_vm3, %v271_v8, %v272_v9 }
 0x1d8   :  { %v277_v11 = vperm.slane %v273_v10, 1 }
 0x1da   :  { %v278_v12 = vsel %vm276_vm4, %v266_v3, %v277_v11 }
 0x1db   :  { %280 = vst.msk [vmem:[%s460_s9] sm:$0x3] %vm279_vm5, %v278_v12 }

</bundles_post_ra>
